<compile_context>
chip_gen: v5e
topology: v5e:2x2
jax: 0.10.0
libtpu: 0.0.40
codegen_flags: <defaults>
</compile_context>

<pallas_src>
import functools

import jax
import jax.numpy as jnp
import numpy as np
from jax.experimental import pallas as pl
from jax.experimental.pallas import tpu as pltpu

LANE = 128
MIN_TILE = 128
MAX_TILE = 8192                          # bounds unroll length & VMEM per block
TARGET_BLOCK_BYTES = 2 * 1024 * 1024     # ~85-90% of HBM roofline per block


def _round_up(n, m):
    return (n + m - 1) // m * m


def _sum_lane_slabs(xb, valid_lanes):
    """Sum the first `valid_lanes` lanes of xb (C, ts) into a (C, 128) partial.

    Unrolled 128-lane slab adds (pure VPU); only the final partial slab is
    masked.  `valid_lanes` is a static Python int.
    """
    c, _ = xb.shape
    full = valid_lanes // LANE
    tail = valid_lanes - full * LANE
    total = jnp.zeros((c, LANE), jnp.float32)
    for g in range(full):
        total = total + xb[:, g * LANE:(g + 1) * LANE]
    if tail:
        lane_idx = jax.lax.broadcasted_iota(jnp.int32, (1, LANE), 1)
        slab = xb[:, full * LANE:(full + 1) * LANE]
        total = total + jnp.where(lane_idx < tail, slab, 0.0)
    return total


def pool_gate_kernel(x_ref, w_ref, gate_ref, acc_ref, *,
                     s_total, ts, num_s, k, conv_pad, inv_s):
    """Global average pool over S (lane axis) + k-tap Conv1d over C + sigmoid."""
    c = acc_ref.shape[0]
    s = pl.program_id(1)

    @pl.when(s == 0)
    def _():
        acc_ref[...] = jnp.zeros_like(acc_ref)

    xb = x_ref[0].astype(jnp.float32)            # (C, ts) f32 in-register
    rem = s_total - (num_s - 1) * ts             # static: valid lanes in last tile

    if rem == ts:
        # Every spatial tile is full: single unmasked accumulation path.
        acc_ref[...] += _sum_lane_slabs(xb, ts)
    else:
        @pl.when(s != num_s - 1)
        def _():
            acc_ref[...] += _sum_lane_slabs(xb, ts)

        @pl.when(s == num_s - 1)
        def _():
            # Partial tail tile: OOB lanes are garbage, mask them out.
            acc_ref[...] += _sum_lane_slabs(xb, rem)

    @pl.when(s == num_s - 1)
    def _():
        # Single cross-lane reduce (XLU), then the channel conv via sublane
        # rolls + VPU FMAs on a lane-replicated (C, 128) copy of the mean.
        mean1 = jnp.sum(acc_ref[...], axis=-1, keepdims=True) * inv_s   # (C, 1)
        meanw = jnp.broadcast_to(mean1, (c, LANE))
        c_idx = jax.lax.broadcasted_iota(jnp.int32, (c, LANE), 0)
        z = jnp.zeros((c, LANE), jnp.float32)
        for t in range(k):
            off = t - conv_pad                   # source channel = c + off
            if off == 0:
                z = z + w_ref[t] * meanw
            else:
                shifted = pltpu.roll(meanw, shift=(-off) % c, axis=0)
                valid = (c_idx + off >= 0) & (c_idx + off < c)  # zero-padded conv
                z = z + w_ref[t] * jnp.where(valid, shifted, 0.0)
        gate_ref[0] = jax.nn.sigmoid(z[:, 0:1])                 # (C, 1)


def scale_kernel(x_ref, gate_ref, o_ref):
    # x * sigmoid(conv(mean)) + x  ==  x * (gate + 1).
    # Compute in f32 vregs (v5e has no bf16 VALU); store in the native dtype.
    xb = x_ref[...].astype(jnp.float32)          # (1, C, ts)
    g = gate_ref[...] + 1.0                      # (1, C, 1) f32, lane broadcast
    o_ref[...] = (xb * g).astype(o_ref.dtype)


def _pick_spatial_tile(c, s_len, itemsize):
    ts = (TARGET_BLOCK_BYTES // max(1, c * itemsize)) // LANE * LANE
    ts = max(MIN_TILE, min(MAX_TILE, ts))
    ts = min(ts, _round_up(s_len, LANE))
    return max(ts, MIN_TILE)


def eca_forward(x, conv_w, *, spatial_tile=None):
    """x: (B, C, D, H, W); conv_w: (1, 1, k) PyTorch Conv1d weight (bias=False)."""
    B, C = x.shape[0], x.shape[1]
    S = int(np.prod(x.shape[2:]))
    w = conv_w.reshape(-1).astype(jnp.float32)
    k = int(w.shape[0])
    conv_pad = (k - 1) // 2

    if spatial_tile is None:
        ts = _pick_spatial_tile(C, S, x.dtype.itemsize)
    else:
        ts = min(_round_up(spatial_tile, LANE), _round_up(S, LANE))
    num_s = (S + ts - 1) // ts

    x3 = x.reshape(B, C, S)      # free view; native dtype, no padding, no casts

    # Kernel 1: pooled mean -> conv1d over C -> sigmoid, per batch.
    gate = pl.pallas_call(
        functools.partial(pool_gate_kernel, s_total=S, ts=ts, num_s=num_s,
                          k=k, conv_pad=conv_pad, inv_s=1.0 / S),
        out_shape=jax.ShapeDtypeStruct((B, C, 1), jnp.float32),
        grid=(B, num_s),
        in_specs=[
            pl.BlockSpec((1, C, ts), lambda b, s: (b, 0, s)),
            pl.BlockSpec(memory_space=pltpu.MemorySpace.SMEM),   # k conv taps
        ],
        out_specs=pl.BlockSpec((1, C, 1), lambda b, s: (b, 0, 0)),
        scratch_shapes=[pltpu.VMEM((C, LANE), jnp.float32)],
        compiler_params=pltpu.CompilerParams(
            dimension_semantics=("parallel", "arbitrary")),
    )(x3, w)

    # Kernel 2: lane-dense elementwise rescale, fully parallel grid, native dtype.
    out = pl.pallas_call(
        scale_kernel,
        out_shape=jax.ShapeDtypeStruct((B, C, S), x.dtype),
        grid=(B, num_s),
        in_specs=[
            pl.BlockSpec((1, C, ts), lambda b, s: (b, 0, s)),
            pl.BlockSpec((1, C, 1), lambda b, s: (b, 0, 0)),
        ],
        out_specs=pl.BlockSpec((1, C, ts), lambda b, s: (b, 0, s)),
        compiler_params=pltpu.CompilerParams(
            dimension_semantics=("parallel", "parallel")),
    )(x3, gate)

    return out.reshape(x.shape)


def eca_reference(x, conv_w):
    """Pure-JAX reference of the PyTorch eca_layer forward (f32 math)."""
    k = conv_w.shape[-1]
    pad = (k - 1) // 2
    xf = x.astype(jnp.float32)
    y = xf.mean(axis=tuple(range(2, x.ndim)))                    # (B, C)
    z = jax.lax.conv_general_dilated(
        y[:, None, :], conv_w.astype(jnp.float32),
        window_strides=(1,), padding=[(pad, pad)],
        dimension_numbers=("NCH", "OIH", "NCH"))[:, 0, :]
    g = jax.nn.sigmoid(z).reshape(z.shape + (1,) * (x.ndim - 2))
    return xf * g + xf


if __name__ == "__main__":
    key = jax.random.PRNGKey(0)
    kx, kw = jax.random.split(key)
    K_SIZE = 3
    B, C, D, H, W = 2, 32, 6, 7, 8           # S = 336 -> exercises ragged tail
    x = jax.random.normal(kx, (B, C, D, H, W), jnp.float32)
    conv_w = jax.random.normal(kw, (1, 1, K_SIZE), jnp.float32) / np.sqrt(K_SIZE)

    ref = eca_reference(x, conv_w)

    # Default (single large tile covering S, masked tail).
    out = jax.block_until_ready(jax.jit(eca_forward)(x, conv_w))
    assert out.shape == x.shape and out.dtype == x.dtype, (out.shape, out.dtype)
    np.testing.assert_allclose(np.asarray(out), np.asarray(ref),
                               rtol=1e-4, atol=1e-4)

    # Forced small tile: multi-tile accumulation + masked final tile.
    out_tiled = jax.block_until_ready(
        jax.jit(functools.partial(eca_forward, spatial_tile=128))(x, conv_w))
    np.testing.assert_allclose(np.asarray(out_tiled), np.asarray(ref),
                               rtol=1e-4, atol=1e-4)

    # Native bf16 storage path (compute stays f32 in-register).
    xb16 = x.astype(jnp.bfloat16)
    out_b16 = jax.block_until_ready(jax.jit(eca_forward)(xb16, conv_w))
    assert out_b16.dtype == jnp.bfloat16
    ref_b16 = eca_reference(xb16, conv_w)
    np.testing.assert_allclose(np.asarray(out_b16.astype(jnp.float32)),
                               np.asarray(ref_b16), rtol=2e-2, atol=2e-2)

    print("KERNEL_OK")
</pallas_src>

<mosaic_0001>
module attributes {stable_mosaic.version = 11 : i64} {
  func.func @scale_kernel(%arg0: i32, %arg1: i32, %arg2: memref<1x32x384xf32, #tpu.memory_space<vmem>>, %arg3: memref<1x32x1xf32, #tpu.memory_space<vmem>>, %arg4: memref<1x32x384xf32, #tpu.memory_space<vmem>>) attributes {dimension_semantics = [#tpu.dimension_semantics<parallel>, #tpu.dimension_semantics<parallel>], iteration_bounds = array<i64: 2, 1>, scalar_prefetch = 0 : i64, scratch_operands = 0 : i64, tpu.core_type = #tpu.core_type<tc>, window_params = [{transform_indices = @transform_0, window_bounds = array<i64: 1, 32, 384>}, {transform_indices = @transform_1, window_bounds = array<i64: 1, 32, 1>}, {transform_indices = @transform_2, window_bounds = array<i64: 1, 32, 384>}]} {
    %c0 = arith.constant 0 : index
    %c0_0 = arith.constant 0 : index
    %c0_1 = arith.constant 0 : index
    %0 = vector.load %arg2[%c0, %c0_0, %c0_1] : memref<1x32x384xf32, #tpu.memory_space<vmem>>, vector<1x32x384xf32>
    %c0_2 = arith.constant 0 : index
    %c0_3 = arith.constant 0 : index
    %c0_4 = arith.constant 0 : index
    %1 = vector.load %arg3[%c0_2, %c0_3, %c0_4] : memref<1x32x1xf32, #tpu.memory_space<vmem>>, vector<1x32x1xf32>
    %cst = arith.constant 1.000000e+00 : f32
    %2 = vector.broadcast %cst : f32 to vector<1x32x1xf32>
    %3 = arith.addf %1, %2 : vector<1x32x1xf32>
    %4 = vector.broadcast %3 : vector<1x32x1xf32> to vector<1x32x384xf32>
    %5 = arith.mulf %0, %4 : vector<1x32x384xf32>
    %c0_5 = arith.constant 0 : index
    %c0_6 = arith.constant 0 : index
    %c0_7 = arith.constant 0 : index
    %6 = vector.load %arg4[%c0_5, %c0_6, %c0_7] : memref<1x32x384xf32, #tpu.memory_space<vmem>>, vector<1x32x384xf32>
    tpu.vector_store %arg4[%c0_5, %c0_6, %c0_7], %5 {strides = array<i32>} : memref<1x32x384xf32, #tpu.memory_space<vmem>>, vector<1x32x384xf32>,
    return
  }
  func.func @transform_0(%arg0: i32, %arg1: i32) -> (i32, i32, i32) {
    %c0_i32 = arith.constant 0 : i32
    %c0_i32_0 = arith.constant 0 : i32
    return %arg0, %c0_i32, %arg1 : i32, i32, i32
  }
  func.func @transform_1(%arg0: i32, %arg1: i32) -> (i32, i32, i32) {
    %c0_i32 = arith.constant 0 : i32
    %c0_i32_0 = arith.constant 0 : i32
    %c0_i32_1 = arith.constant 0 : i32
    return %arg0, %c0_i32, %c0_i32_0 : i32, i32, i32
  }
  func.func @transform_2(%arg0: i32, %arg1: i32) -> (i32, i32, i32) {
    %c0_i32 = arith.constant 0 : i32
    %c0_i32_0 = arith.constant 0 : i32
    return %arg0, %c0_i32, %arg1 : i32, i32, i32
  }
}

module attributes {stable_mosaic.version = 11 : i64} {
  func.func @pool_gate_kernel(%arg0: i32, %arg1: i32, %arg2: memref<1x32x384xf32, #tpu.memory_space<vmem>>, %arg3: memref<3xf32, #tpu.memory_space<smem>>, %arg4: memref<1x32x1xf32, #tpu.memory_space<vmem>>, %arg5: memref<32x128xf32, #tpu.memory_space<vmem>>) attributes {dimension_semantics = [#tpu.dimension_semantics<parallel>, #tpu.dimension_semantics<arbitrary>], iteration_bounds = array<i64: 2, 1>, scalar_prefetch = 0 : i64, scratch_operands = 1 : i64, tpu.core_type = #tpu.core_type<tc>, window_params = [{transform_indices = @transform_0, window_bounds = array<i64: 1, 32, 384>}, {transform_indices = @transform_1, window_bounds = array<i64: 3>}, {transform_indices = @transform_2, window_bounds = array<i64: 1, 32, 1>}]} {
    %c0_i32 = arith.constant 0 : i32
    %0 = arith.cmpi eq, %arg1, %c0_i32 : i32
    %1 = arith.extui %0 : i1 to i32
    %c0_i32_0 = arith.constant 0 : i32
    %2 = arith.cmpi ne, %1, %c0_i32_0 : i32
    scf.if %2 {
      %cst = arith.constant 0.000000e+00 : f32
      %14 = vector.broadcast %cst : f32 to vector<32x128xf32>
      %c0_9 = arith.constant 0 : index
      %c0_10 = arith.constant 0 : index
      %15 = vector.load %arg5[%c0_9, %c0_10] : memref<32x128xf32, #tpu.memory_space<vmem>>, vector<32x128xf32>
      tpu.vector_store %arg5[%c0_9, %c0_10], %14 {strides = array<i32>} : memref<32x128xf32, #tpu.memory_space<vmem>>, vector<32x128xf32>,
    } else {
    }
    %c0 = arith.constant 0 : index
    %c0_1 = arith.constant 0 : index
    %c0_2 = arith.constant 0 : index
    %3 = vector.load %arg2[%c0, %c0_1, %c0_2] : memref<1x32x384xf32, #tpu.memory_space<vmem>>, vector<1x32x384xf32>
    %4 = vector.shape_cast %3 : vector<1x32x384xf32> to vector<32x384xf32>
    %c0_i32_3 = arith.constant 0 : i32
    %5 = arith.cmpi ne, %arg1, %c0_i32_3 : i32
    %6 = arith.extui %5 : i1 to i32
    %c0_i32_4 = arith.constant 0 : i32
    %7 = arith.cmpi ne, %6, %c0_i32_4 : i32
    scf.if %7 {
      %c0_9 = arith.constant 0 : index
      %c0_10 = arith.constant 0 : index
      %14 = vector.load %arg5[%c0_9, %c0_10] : memref<32x128xf32, #tpu.memory_space<vmem>>, vector<32x128xf32>
      %cst = arith.constant 0.000000e+00 : f32
      %15 = vector.broadcast %cst : f32 to vector<32x128xf32>
      %16 = vector.extract_strided_slice %4 {offsets = [0, 0], sizes = [32, 128], strides = [1, 1]} : vector<32x384xf32> to vector<32x128xf32>
      %17 = arith.addf %15, %16 : vector<32x128xf32>
      %18 = vector.extract_strided_slice %4 {offsets = [0, 128], sizes = [32, 128], strides = [1, 1]} : vector<32x384xf32> to vector<32x128xf32>
      %19 = arith.addf %17, %18 : vector<32x128xf32>
      %20 = vector.extract_strided_slice %4 {offsets = [0, 256], sizes = [32, 128], strides = [1, 1]} : vector<32x384xf32> to vector<32x128xf32>
      %21 = arith.addf %19, %20 : vector<32x128xf32>
      %22 = arith.addf %14, %21 : vector<32x128xf32>
      %c0_11 = arith.constant 0 : index
      %c0_12 = arith.constant 0 : index
      %23 = vector.load %arg5[%c0_11, %c0_12] : memref<32x128xf32, #tpu.memory_space<vmem>>, vector<32x128xf32>
      tpu.vector_store %arg5[%c0_11, %c0_12], %22 {strides = array<i32>} : memref<32x128xf32, #tpu.memory_space<vmem>>, vector<32x128xf32>,
    } else {
    }
    %c0_i32_5 = arith.constant 0 : i32
    %8 = arith.cmpi eq, %arg1, %c0_i32_5 : i32
    %9 = arith.extui %8 : i1 to i32
    %c0_i32_6 = arith.constant 0 : i32
    %10 = arith.cmpi ne, %9, %c0_i32_6 : i32
    scf.if %10 {
      %c0_9 = arith.constant 0 : index
      %c0_10 = arith.constant 0 : index
      %14 = vector.load %arg5[%c0_9, %c0_10] : memref<32x128xf32, #tpu.memory_space<vmem>>, vector<32x128xf32>
      %cst = arith.constant 0.000000e+00 : f32
      %15 = vector.broadcast %cst : f32 to vector<32x128xf32>
      %16 = vector.extract_strided_slice %4 {offsets = [0, 0], sizes = [32, 128], strides = [1, 1]} : vector<32x384xf32> to vector<32x128xf32>
      %17 = arith.addf %15, %16 : vector<32x128xf32>
      %18 = vector.extract_strided_slice %4 {offsets = [0, 128], sizes = [32, 128], strides = [1, 1]} : vector<32x384xf32> to vector<32x128xf32>
      %19 = arith.addf %17, %18 : vector<32x128xf32>
      %20 = tpu.iota {dimensions = array<i32: 1>} : vector<1x128xi32>
      %21 = vector.extract_strided_slice %4 {offsets = [0, 256], sizes = [32, 128], strides = [1, 1]} : vector<32x384xf32> to vector<32x128xf32>
      %c80_i32 = arith.constant 80 : i32
      %22 = vector.broadcast %c80_i32 : i32 to vector<1x128xi32>
      %23 = arith.cmpi slt, %20, %22 : vector<1x128xi32>
      %cst_11 = arith.constant 0.000000e+00 : f32
      %24 = vector.shape_cast %23 : vector<1x128xi1> to vector<1x128xi1>
      %25 = vector.broadcast %24 : vector<1x128xi1> to vector<32x128xi1>
      %26 = vector.broadcast %cst_11 : f32 to vector<32x128xf32>
      %27 = arith.select %25, %21, %26 : vector<32x128xi1>, vector<32x128xf32>
      %28 = arith.addf %19, %27 : vector<32x128xf32>
      %29 = arith.addf %14, %28 : vector<32x128xf32>
      %c0_12 = arith.constant 0 : index
      %c0_13 = arith.constant 0 : index
      %30 = vector.load %arg5[%c0_12, %c0_13] : memref<32x128xf32, #tpu.memory_space<vmem>>, vector<32x128xf32>
      tpu.vector_store %arg5[%c0_12, %c0_13], %29 {strides = array<i32>} : memref<32x128xf32, #tpu.memory_space<vmem>>, vector<32x128xf32>,
    } else {
    }
    %c0_i32_7 = arith.constant 0 : i32
    %11 = arith.cmpi eq, %arg1, %c0_i32_7 : i32
    %12 = arith.extui %11 : i1 to i32
    %c0_i32_8 = arith.constant 0 : i32
    %13 = arith.cmpi ne, %12, %c0_i32_8 : i32
    scf.if %13 {
      %c0_9 = arith.constant 0 : index
      %c0_10 = arith.constant 0 : index
      %14 = vector.load %arg5[%c0_9, %c0_10] : memref<32x128xf32, #tpu.memory_space<vmem>>, vector<32x128xf32>
      %cst = arith.constant dense<0.000000e+00> : vector<32xf32>
      %15 = vector.multi_reduction <add>, %14, %cst [1] : vector<32x128xf32> to vector<32xf32>
      %16 = vector.shape_cast %15 : vector<32xf32> to vector<32x1xf32>
      %cst_11 = arith.constant 0.00297619053 : f32
      %17 = vector.broadcast %cst_11 : f32 to vector<32x1xf32>
      %18 = arith.mulf %16, %17 : vector<32x1xf32>
      %19 = vector.shape_cast %18 : vector<32x1xf32> to vector<32x1xf32>
      %20 = vector.broadcast %19 : vector<32x1xf32> to vector<32x128xf32>
      %21 = tpu.iota {dimensions = array<i32: 0>} : vector<32x128xi32>
      %cst_12 = arith.constant 0.000000e+00 : f32
      %22 = vector.broadcast %cst_12 : f32 to vector<32x128xf32>
      %c1_i32 = arith.constant 1 : i32
      %23 = tpu.dynamic_rotate %20 by %c1_i32 dim 0 : vector<32x128xf32>, i32 -> vector<32x128xf32>
      %c-1_i32 = arith.constant -1 : i32
      %24 = vector.broadcast %c-1_i32 : i32 to vector<32x128xi32>
      %25 = arith.addi %21, %24 : vector<32x128xi32>
      %c0_i32_13 = arith.constant 0 : i32
      %26 = vector.broadcast %c0_i32_13 : i32 to vector<32x128xi32>
      %27 = arith.cmpi sge, %25, %26 : vector<32x128xi32>
      %c-1_i32_14 = arith.constant -1 : i32
      %28 = vector.broadcast %c-1_i32_14 : i32 to vector<32x128xi32>
      %29 = arith.addi %21, %28 : vector<32x128xi32>
      %c32_i32 = arith.constant 32 : i32
      %30 = vector.broadcast %c32_i32 : i32 to vector<32x128xi32>
      %31 = arith.cmpi slt, %29, %30 : vector<32x128xi32>
      %32 = arith.andi %27, %31 : vector<32x128xi1>
      %c0_15 = arith.constant 0 : index
      %33 = memref.load %arg3[%c0_15] : memref<3xf32, #tpu.memory_space<smem>>
      %cst_16 = arith.constant 0.000000e+00 : f32
      %34 = vector.broadcast %cst_16 : f32 to vector<32x128xf32>
      %35 = arith.select %32, %23, %34 : vector<32x128xi1>, vector<32x128xf32>
      %36 = vector.broadcast %33 : f32 to vector<32x128xf32>
      %37 = arith.mulf %36, %35 : vector<32x128xf32>
      %38 = arith.addf %22, %37 : vector<32x128xf32>
      %c1 = arith.constant 1 : index
      %39 = memref.load %arg3[%c1] : memref<3xf32, #tpu.memory_space<smem>>
      %40 = vector.broadcast %39 : f32 to vector<32x128xf32>
      %41 = arith.mulf %40, %20 : vector<32x128xf32>
      %42 = arith.addf %38, %41 : vector<32x128xf32>
      %c31_i32 = arith.constant 31 : i32
      %43 = tpu.dynamic_rotate %20 by %c31_i32 dim 0 : vector<32x128xf32>, i32 -> vector<32x128xf32>
      %c1_i32_17 = arith.constant 1 : i32
      %44 = vector.broadcast %c1_i32_17 : i32 to vector<32x128xi32>
      %45 = arith.addi %21, %44 : vector<32x128xi32>
      %c0_i32_18 = arith.constant 0 : i32
      %46 = vector.broadcast %c0_i32_18 : i32 to vector<32x128xi32>
      %47 = arith.cmpi sge, %45, %46 : vector<32x128xi32>
      %c1_i32_19 = arith.constant 1 : i32
      %48 = vector.broadcast %c1_i32_19 : i32 to vector<32x128xi32>
      %49 = arith.addi %21, %48 : vector<32x128xi32>
      %c32_i32_20 = arith.constant 32 : i32
      %50 = vector.broadcast %c32_i32_20 : i32 to vector<32x128xi32>
      %51 = arith.cmpi slt, %49, %50 : vector<32x128xi32>
      %52 = arith.andi %47, %51 : vector<32x128xi1>
      %c2 = arith.constant 2 : index
      %53 = memref.load %arg3[%c2] : memref<3xf32, #tpu.memory_space<smem>>
      %cst_21 = arith.constant 0.000000e+00 : f32
      %54 = vector.broadcast %cst_21 : f32 to vector<32x128xf32>
      %55 = arith.select %52, %43, %54 : vector<32x128xi1>, vector<32x128xf32>
      %56 = vector.broadcast %53 : f32 to vector<32x128xf32>
      %57 = arith.mulf %56, %55 : vector<32x128xf32>
      %58 = arith.addf %42, %57 : vector<32x128xf32>
      %59 = vector.extract_strided_slice %58 {offsets = [0, 0], sizes = [32, 1], strides = [1, 1]} : vector<32x128xf32> to vector<32x1xf32>
      %60 = arith.negf %59 : vector<32x1xf32>
      %61 = math.exp %60 : vector<32x1xf32>
      %cst_22 = arith.constant 1.000000e+00 : f32
      %62 = vector.broadcast %cst_22 : f32 to vector<32x1xf32>
      %63 = arith.addf %62, %61 : vector<32x1xf32>
      %64 = arith.divf %62, %63 : vector<32x1xf32>
      %c0_23 = arith.constant 0 : index
      %c0_24 = arith.constant 0 : index
      %c0_25 = arith.constant 0 : index
      %65 = vector.load %arg4[%c0_23, %c0_24, %c0_25] : memref<1x32x1xf32, #tpu.memory_space<vmem>>, vector<1x32x1xf32>
      %66 = vector.shape_cast %65 : vector<1x32x1xf32> to vector<32x1xf32>
      %67 = vector.shape_cast %64 : vector<32x1xf32> to vector<1x32x1xf32>
      tpu.vector_store %arg4[%c0_23, %c0_24, %c0_25], %67 {strides = array<i32>} : memref<1x32x1xf32, #tpu.memory_space<vmem>>, vector<1x32x1xf32>,
    } else {
    }
    return
  }
  func.func @transform_0(%arg0: i32, %arg1: i32) -> (i32, i32, i32) {
    %c0_i32 = arith.constant 0 : i32
    %c0_i32_0 = arith.constant 0 : i32
    return %arg0, %c0_i32, %arg1 : i32, i32, i32
  }
  func.func @transform_1(%arg0: i32, %arg1: i32) -> i32 {
    %c0_i32 = arith.constant 0 : i32
    %c0_i32_0 = arith.constant 0 : i32
    return %c0_i32 : i32
  }
  func.func @transform_2(%arg0: i32, %arg1: i32) -> (i32, i32, i32) {
    %c0_i32 = arith.constant 0 : i32
    %c0_i32_0 = arith.constant 0 : i32
    %c0_i32_1 = arith.constant 0 : i32
    return %arg0, %c0_i32, %c0_i32_0 : i32, i32, i32
  }
}

</mosaic_0001>

<bundles_post_ra>
// kernel: eca_forward.3
= control target key start
LH: loop header
LB: loop body
LE: loop exit
PB: predicated region body
PF: predicated region fallthrough
CT: control target
= control target key end

     0   :  { %s446_s9 = smov 0   ;;  %s448_s10 = smov 0   ;;  %s510_s0 = inlined_call_operand.vmem [shape: f32[2,32,336], index: 0, kind: input, shape index: {}]   ;;  %s511_s1 = inlined_call_operand.vmem [shape: f32[2,32,1], index: 1, kind: input, shape index: {}]   ;;  %s512_s2 = inlined_call_operand.vmem [shape: f32[2,32,336], index: 2, kind: output, shape index: {}]  }
   0x1   :  { %s450_s11 = smov 0  }
   0x2 LB: > { %s24_s12 = sadd.s32 1, %s424_s10  ;;  %p370_p0 = scmp.ge.s32.totalorder %s428_s11, 1  ;;  %s428_s11 = sphi %s450_s11, %s12_s11   ;;  %s424_s10 = sphi %s448_s10, %s514_s10   ;;  %s420_s9 = sphi %s446_s9, %s513_s9  }
   0x3   : > { %p26_p1 = scmp.ge.s32.totalorder %s24_s12, 2  ;;  %p143_p2 = scmp.lt.s32.totalorder %s428_s11, 3 }
   0x5   : > { %s516_s12 = smov (%p26_p1, %s24_s12), 0  ;;  %p144_p3 = pnand %p370_p0, %p143_p2 }
   0x6   : > { %p179_p4 = scmp.lt.s32.totalorder (!%p144_p3), %s420_s9, 1 }
   0x7   : > { %147 = sbr.rel (%p144_p3) target bundleno = 149 (0x95), region = 28 }
   0xc   : > { %v430_v0 = vmov 0   ;;  %s518_s9 = smov (!%p179_p4, %s420_s9), 1 }
   0xd   : > { %405 = vset.pattern.permute.xlu1 %v430_v0  ;;  %404 = vset.pattern.permute.xlu0 %v430_v0  ;;  %s377_s13 = sshll.u32 %s518_s9, 5  ;;  %s378_s17 = smul.u32 96, %s518_s9 }
   0xe   : > { %s192_s16 = scalar_lea.vmem %s511_s1, %s377_s13 }
   0xf   : > { %v217_v1 = vld [vmem:[%s192_s16 + $0x10] sm:$0xff]  ;;  %v215_v2 = vld [vmem:[%s192_s16] sm:$0xff]  ;;  %v218_v5 = vld [vmem:[%s192_s16 + $0x18] sm:$0xff]  ;;  %s470_s20 = scalar_lea.vmem %s510_s0, %s378_s17  ;;  %s479_s23 = scalar_lea.vmem %s512_s2, %s378_s17 }
  0x10   : > { %v221_v3 = vadd.f32 1.0, %v217_v1  ;;  %v219_v4 = vadd.f32 1.0, %v215_v2  ;;  %v216_v6 = vld [vmem:[%s192_s16 + $0x8] sm:$0xff]  ;;  %v222_v7 = vadd.f32 1.0, %v218_v5  ;;  %v209_v9 = vld [vmem:[%s470_s20 + $0x30] sm:$0xff]  ;;  %v210_v10 = vld [vmem:[%s470_s20 + $0x38] sm:$0xff] }
  0x11   : > { %v220_v8 = vadd.f32 1.0, %v216_v6  ;;  %v211_v11 = vld [vmem:[%s470_s20 + $0x40] sm:$0xff]  ;;  %v204_v15 = vld [vmem:[%s470_s20 + $0x8] sm:$0xff]  ;;  %v205_v19 = vld [vmem:[%s470_s20 + $0x10] sm:$0xff] }
  0x12   : > { %235 = vperm.xlu1 %405, %v221_v3   ;;  %225 = vperm.xlu0 %404, %v219_v4   ;;  %v203_v12 = vld [vmem:[%s470_s20] sm:$0xff]  ;;  %v212_v23 = vld [vmem:[%s470_s20 + $0x48] sm:$0xff]  ;;  %v213_v24 = vld [vmem:[%s470_s20 + $0x50] sm:$0xff] }
  0x13   : > { %v214_v25 = vld [vmem:[%s470_s20 + $0x58] sm:$0xff]  ;;  %v207_v29 = vld [vmem:[%s470_s20 + $0x20] sm:$0xff]  ;;  %v208_v33 = vld [vmem:[%s470_s20 + $0x28] sm:$0xff] }
  0x14   : > { %v206_v26 = vld [vmem:[%s470_s20 + $0x18] sm:$0xff] }
  0x1a   : > { %240 = vperm.xlu1 %405, %v222_v7   ;;  %230 = vperm.xlu0 %404, %v220_v8  }
  0x84   : > { %v236_v13 = vpop.permute.xlu1 %235  ;;  %v226_v14 = vpop.permute.xlu0 %225 }
  0x85   : > { %v249_v16 = vmul.f32 %v236_v13, %v209_v9  ;;  %v250_v17 = vmul.f32 %v236_v13, %v210_v10  ;;  %v251_v18 = vmul.f32 %v236_v13, %v211_v11  ;;  %v243_v20 = vmul.f32 %v226_v14, %v203_v12 }
  0x86   : > { %v244_v21 = vmul.f32 %v226_v14, %v204_v15  ;;  %v245_v22 = vmul.f32 %v226_v14, %v205_v19 }
  0x87   : > { %261 = vst [vmem:[%s479_s23 + $0x30] sm:$0xff] %v249_v16 }
  0x88   : > { %262 = vst [vmem:[%s479_s23 + $0x38] sm:$0xff] %v250_v17 }
  0x89   : > { %263 = vst [vmem:[%s479_s23 + $0x40] sm:$0xff] %v251_v18 }
  0x8a   : > { %255 = vst [vmem:[%s479_s23] sm:$0xff] %v243_v20 }
  0x8b   : > { %256 = vst [vmem:[%s479_s23 + $0x8] sm:$0xff] %v244_v21 }
  0x8c   : > { %257 = vst [vmem:[%s479_s23 + $0x10] sm:$0xff] %v245_v22  ;;  %v241_v27 = vpop.permute.xlu1 %240  ;;  %v231_v28 = vpop.permute.xlu0 %230 }
  0x8d   : > { %v252_v30 = vmul.f32 %v241_v27, %v212_v23  ;;  %v253_v31 = vmul.f32 %v241_v27, %v213_v24  ;;  %v254_v32 = vmul.f32 %v241_v27, %v214_v25  ;;  %v246_v34 = vmul.f32 %v231_v28, %v206_v26 }
  0x8e   : > { %v247_v35 = vmul.f32 %v231_v28, %v207_v29  ;;  %v248_v36 = vmul.f32 %v231_v28, %v208_v33 }
  0x8f   : > { %264 = vst [vmem:[%s479_s23 + $0x48] sm:$0xff] %v252_v30 }
  0x90   : > { %265 = vst [vmem:[%s479_s23 + $0x50] sm:$0xff] %v253_v31 }
  0x91   : > { %266 = vst [vmem:[%s479_s23 + $0x58] sm:$0xff] %v254_v32 }
  0x92   : > { %258 = vst [vmem:[%s479_s23 + $0x18] sm:$0xff] %v246_v34 }
  0x93   : > { %259 = vst [vmem:[%s479_s23 + $0x20] sm:$0xff] %v247_v35 }
  0x94   : > { %260 = vst [vmem:[%s479_s23 + $0x28] sm:$0xff] %v248_v36 }
  0x95 PF: > { %s12_s11 = sadd.s32 1, %s428_s11   ;;  %s513_s9 = smov %s424_s10 }
  0x96   : > { %p9_p5 = scmp.ge.s32.totalorder %s12_s11, 4   ;;  %s514_s10 = smov %s516_s12 }
  0x98   :  { %11 = sbr.rel (!%p9_p5) target bundleno = 2 (0x2), region = 61 }

// kernel: eca_forward.2
= control target key start
LH: loop header
LB: loop body
LE: loop exit
PB: predicated region body
PF: predicated region fallthrough
CT: control target
= control target key end

     0   :  { %7 = vsyncpa [#allocation4], 0  ;;  %s672_s9 = smov 0   ;;  %s674_s10 = smov 0   ;;  %s753_s0 = inlined_call_operand.vmem [shape: f32[2,32,336], index: 0, kind: input, shape index: {}]   ;;  %s754_s1 = inlined_call_operand.vmem [shape: f32[3], index: 1, kind: input, shape index: {}]   ;;  %s755_s2 = inlined_call_operand.vmem [shape: f32[2,32,1], index: 2, kind: output, shape index: {}]  }
   0x1   :  { %s676_s11 = smov 0  }
   0x2 LB: > { %s542_s12 = sadd.s32 4294967295, %s654_s11   ;;  %s25_s13 = sadd.s32 1, %s650_s10  ;;  %s654_s11 = sphi %s676_s11, %s13_s11   ;;  %s650_s10 = sphi %s674_s10, %s759_s10   ;;  %s646_s9 = sphi %s672_s9, %s758_s9  }
   0x3   : > { %p27_p0 = scmp.ge.s32.totalorder %s25_s13, 2  ;;  %p544_p1 = scmp.ge.s32.totalorder %s654_s11, 1 }
   0x4   : > { %p105_p2 = scmp.lt.s32.totalorder %s654_s11, 3  ;;  %p570_p4 = scmp.eq.s32.totalorder %s542_s12, 0 }
   0x5   : > { %s761_s13 = smov (%p27_p0, %s25_s13), 0  ;;  %s117_s16 = sshll.u32 %s754_s1, 4  ;;  %s118_s16 = int_to_ptr.vmem [resolvable:$true] %s117_s16 }
   0x6   : > { %p106_p3 = pnand %p544_p1, %p105_p2  ;;  %s656_s17 = smov [#allocation3]  }
   0x8   : > { %p566_p5 = pneg %p106_p3  ;;  %143 = sbr.rel (%p106_p3) target bundleno = 194 (0xc2), region = 28 }
   0xa   : > { %p567_p6 = pnand %p570_p4, %p566_p5 }
   0xc   : > { %569 = dma.vmem_to_smem (!%p567_p6), %s118_s16, 16, %s656_s17, [#allocation4]  }
   0xd   : > { %641 = dma.done.wait (%p570_p4), [#allocation4], 16  }
   0xe   : > { %643 = vsyncadd (%p570_p4), [#allocation4], 4294967280 }
   0xf   : > { %150 = sfence }
  0x10   : > { %p172_p7 = scmp.lt.s32.totalorder %s646_s9, 1  ;;  %v249_v0 = vlaneseq  ;;  %s316_s22 = sld [smem:[#allocation3]]  ;;  %vm455_vm5 = vcmask 7168  }
  0x11   : > { %s552_s23 = sld [smem:[#allocation3 + $0x1]] }
  0x12   : > { %s763_s9 = smov (!%p172_p7, %s646_s9), 1  ;;  %v250_v1 = vand.u32 127, %v249_v0  ;;  %v287_v26 = vshrl.u32 %v249_v0, 7  ;;  %s553_s24 = sld [smem:[#allocation3 + $0x2]] }
  0x13   : > { %s561_s18 = smul.u32 96, %s763_s9  ;;  %s560_s25 = sshll.u32 %s763_s9, 5 }
  0x14   : > { %vm251_vm0 = vcmp.lt.s32.totalorder %v250_v1, 80  ;;  %vm295_vm1 = vcmp.lt.s32.totalorder %v287_v26, 1  ;;  %v290_v32 = vadd.s32 24, %v287_v26  ;;  %v300_v36 = vadd.s32 4294967295, %v287_v26  ;;  %s726_s28 = scalar_lea.vmem %s755_s2, %s560_s25 }
  0x15   : > { %s179_s21 = scalar_lea.vmem %s753_s0, %s561_s18  ;;  %vm344_vm2 = vcmp.lt.s32.totalorder %v287_v26, 7 }
  0x16   : > { %v197_v2 = vld [vmem:[%s179_s21 + $0x18] sm:$0xff]  ;;  %v198_v3 = vld [vmem:[%s179_s21 + $0x20] sm:$0xff]  ;;  %v199_v4 = vld [vmem:[%s179_s21 + $0x28] sm:$0xff]  ;;  %v321_v34 = vstv %s316_s22  ;;  %v352_v38 = vadd.s32 1, %v290_v32  ;;  %vm304_vm3 = vcmp.ge.s32.totalorder %v300_v36, 0 }
  0x17   : > { %v246_v5 = vadd.f32 %v198_v3, %v197_v2  ;;  %v255_v6 = vsel %vm251_vm0, %v199_v4, 0.0  ;;  %v194_v7 = vld [vmem:[%s179_s21] sm:$0xff]  ;;  %v195_v8 = vld [vmem:[%s179_s21 + $0x8] sm:$0xff]  ;;  %v196_v9 = vld [vmem:[%s179_s21 + $0x10] sm:$0xff]  ;;  %v331_v37 = vstv %s552_s23 }
  0x18   : > { %v245_v10 = vadd.f32 %v195_v8, %v194_v7  ;;  %v254_v11 = vsel %vm251_vm0, %v196_v9, 0.0  ;;  %v200_v12 = vld [vmem:[%s179_s21 + $0x30] sm:$0xff]  ;;  %v201_v13 = vld [vmem:[%s179_s21 + $0x38] sm:$0xff]  ;;  %v202_v15 = vld [vmem:[%s179_s21 + $0x40] sm:$0xff]  ;;  %v370_v46 = vstv %s553_s24  ;;  %vm360_vm4 = vcmp.lt.s32.totalorder %v352_v38, 32 }
  0x19   : > { %v259_v14 = vadd.f32 %v255_v6, %v246_v5  ;;  %v203_v16 = vld [vmem:[%s179_s21 + $0x48] sm:$0xff]  ;;  %v204_v17 = vld [vmem:[%s179_s21 + $0x50] sm:$0xff]  ;;  %v205_v19 = vld [vmem:[%s179_s21 + $0x58] sm:$0xff]  ;;  %v247_v20 = vadd.f32 %v201_v13, %v200_v12  ;;  %v256_v21 = vsel %vm251_vm0, %v202_v15, 0.0 }
  0x1a   : > { %v258_v18 = vadd.f32 %v254_v11, %v245_v10  ;;  %v248_v22 = vadd.f32 %v204_v17, %v203_v16  ;;  %v257_v23 = vsel %vm251_vm0, %v205_v19, 0.0 }
  0x1b   : > { %276 = vadd.xlane.f32.xlu1 %v259_v14  ;;  %v260_v24 = vadd.f32 %v256_v21, %v247_v20 }
  0x1c   : > { %274 = vadd.xlane.f32.xlu0 %v258_v18  ;;  %v261_v25 = vadd.f32 %v257_v23, %v248_v22 }
  0x23   : > { %278 = vadd.xlane.f32.xlu1 %v260_v24 }
  0x24   : > { %280 = vadd.xlane.f32.xlu0 %v261_v25 }
  0x8e   : > { %v277_v27 = vpop.xlane.xlu1 %276 }
  0x8f   : > { %v283_v28 = vmul.f32 0.0029761905, %v277_v27  ;;  %v275_v29 = vpop.xlane.xlu0 %274 }
  0x90   : > { %v282_v30 = vmul.f32 0.0029761905, %v275_v29 }
  0x91   : > { %v292_v31 = vrot.slane %v283_v28, 7  ;;  %v341_v39 = vrot.slane %v283_v28, 1  ;;  %v333_v45 = vmul.f32 %v331_v37, %v283_v28 }
  0x92   : > { %v291_v33 = vrot.slane %v282_v30, 7  ;;  %v340_v41 = vrot.slane %v282_v30, 1  ;;  %v332_v48 = vmul.f32 %v331_v37, %v282_v30 }
  0x94   : > { %v298_v35 = vsel %vm295_vm1, %v291_v33, %v292_v31  ;;  %v347_v52 = vsel %vm344_vm2, %v340_v41, %v341_v39 }
  0x95   : > { %v323_v40 = vmul.f32 %v321_v34, %v298_v35  ;;  %v371_v10 = vmul.f32 %v370_v46, %v347_v52 }
  0x96   : > { %v279_v42 = vpop.xlane.xlu1 %278 }
  0x97   : > { %v284_v43 = vmul.f32 0.0029761905, %v279_v42  ;;  %v281_v44 = vpop.xlane.xlu0 %280  ;;  %v337_v51 = vadd.f32 %v333_v45, %v323_v40 }
  0x98   : > { %v285_v47 = vmul.f32 0.0029761905, %v281_v44 }
  0x99   : > { %v293_v49 = vrot.slane %v284_v43, 7  ;;  %v342_v50 = vrot.slane %v284_v43, 1  ;;  %v334_v56 = vmul.f32 %v331_v37, %v284_v43 }
  0x9a   : > { %v294_v53 = vrot.slane %v285_v47, 7  ;;  %v343_v54 = vrot.slane %v285_v47, 1  ;;  %v335_v58 = vmul.f32 %v331_v37, %v285_v47 }
  0x9b   : > { %v297_v55 = vsel %vm295_vm1, %v292_v31, %v293_v49  ;;  %v346_v57 = vsel %vm344_vm2, %v341_v39, %v342_v50 }
  0x9c   : > { %v324_v59 = vmul.f32 %v321_v34, %v297_v55  ;;  %v372_v60 = vmul.f32 %v370_v46, %v346_v57  ;;  %v296_v61 = vsel %vm295_vm1, %v293_v49, %v294_v53  ;;  %v299_v62 = vsel %vm295_vm1, %v294_v53, %v291_v33 }
  0x9d   : > { %v317_v63 = vsel %vm304_vm3, %v299_v62, 0.0  ;;  %v325_v0 = vmul.f32 %v321_v34, %v296_v61  ;;  %v345_v1 = vsel %vm344_vm2, %v342_v50, %v343_v54  ;;  %v348_v2 = vsel %vm344_vm2, %v343_v54, %v340_v41 }
  0x9e   : > { %v338_v3 = vadd.f32 %v334_v56, %v324_v59  ;;  %v376_v4 = vadd.f32 %v372_v60, %v337_v51  ;;  %v322_v5 = vmul.f32 %v321_v34, %v317_v63  ;;  %v369_v6 = vsel %vm360_vm4, %v348_v2, 0.0 }
  0x9f   : > { %v339_v7 = vadd.f32 %v335_v58, %v325_v0  ;;  %v373_v8 = vmul.f32 %v370_v46, %v345_v1  ;;  %v374_v9 = vmul.f32 %v370_v46, %v369_v6 }
  0xa0   : > { %v555_v11 = vmul.f32 -1.442695, %v376_v4  ;;  %v336_v12 = vadd.f32 %v332_v48, %v322_v5 }
  0xa1   : > { %v377_v13 = vadd.f32 %v373_v8, %v338_v3  ;;  %v378_v14 = vadd.f32 %v374_v9, %v339_v7 }
  0xa2   : > { %597 = vpow2.f32 %v555_v11  ;;  %v375_v15 = vadd.f32 %v371_v10, %v336_v12 }
  0xa3   : > { %v556_v16 = vmul.f32 -1.442695, %v377_v13  ;;  %v557_v17 = vmul.f32 -1.442695, %v378_v14 }
  0xa4   : > { %v554_v18 = vmul.f32 -1.442695, %v375_v15 }
  0xa5   : > { %599 = vpow2.f32 %v556_v16 }
  0xa6   : > { %601 = vpow2.f32 %v554_v18 }
  0xa7   : > { %603 = vpow2.f32 %v557_v17 }
  0xa8   : > { %v598_v19 = vpop.eup %597 }
  0xa9   : > { %v392_v20 = vadd.f32 1.0, %v598_v19 }
  0xab   : > { %v600_v21 = vpop.eup %599  ;;  %605 = vrcp.f32 %v392_v20  ;;  %v419_v28 = vand.u32 2147483647, %v392_v20  ;;  %v421_v29 = vand.u32 2147483648, %v392_v20  ;;  %vm415_vm6 = vweird.f32 %v392_v20 }
  0xac   : > { %v602_v22 = vpop.eup %601  ;;  %v393_v23 = vadd.f32 1.0, %v600_v21 }
  0xad   : > { %v604_v24 = vpop.eup %603  ;;  %v391_v25 = vadd.f32 1.0, %v602_v22  ;;  %vm717_vm7 = vcmp.eq.f32.partialorder %v419_v28, 8.507059e+37  ;;  %v422_v35 = vor.u32 1.1754944e-38, %v421_v29 }
  0xae   : > { %v714_v26 = vadd.f32 1.0, %v604_v24  ;;  %607 = vrcp.f32 %v393_v23  ;;  %vm430_vm9 = vweird.f32 %v393_v23  ;;  %v434_v42 = vand.u32 2147483647, %v393_v23 }
  0xaf   : > { %609 = vrcp.f32 %v391_v25  ;;  %v404_v40 = vand.u32 2147483647, %v391_v25  ;;  %v406_v46 = vand.u32 2147483648, %v391_v25  ;;  %v436_v47 = vand.u32 2147483648, %v393_v23 }
  0xb0   : > { %611 = vrcp.f32 %v714_v26  ;;  %v449_v50 = vand.u32 2147483647, %v714_v26  ;;  %v451_v53 = vand.u32 2147483648, %v714_v26  ;;  %vm400_vm14 = vweird.f32 %v391_v25 }
  0xb1   : > { %v606_v27 = vpop.eup %605  ;;  %vm435_vm0 = vcmp.eq.f32.partialorder %v434_v42, 8.507059e+37  ;;  %v437_v58 = vor.u32 1.1754944e-38, %v436_v47  ;;  %v407_v59 = vor.u32 1.1754944e-38, %v406_v46  ;;  %vm445_vm2 = vweird.f32 %v714_v26 }
  0xb2   : > { %v411_v30 = vmul.f32 %v606_v27, %v392_v20  ;;  %vm416_vm8 = vweird.f32 %v606_v27  ;;  %vm405_vm3 = vcmp.eq.f32.partialorder %v404_v40, 8.507059e+37  ;;  %v452_v0 = vor.u32 1.1754944e-38, %v451_v53 }
  0xb3   : > { %vm417_vm10 = vmor %vm415_vm6, %vm416_vm8  ;;  %vm450_vm6 = vcmp.eq.f32.partialorder %v449_v50, 8.507059e+37 }
  0xb4   : > { %v608_v31 = vpop.eup %607  ;;  %v412_v32 = vsub.f32 1.0, %v411_v30 }
  0xb5   : > { %v610_v33 = vpop.eup %609  ;;  %v426_v36 = vmul.f32 %v608_v31, %v393_v23  ;;  %vm431_vm11 = vweird.f32 %v608_v31 }
  0xb6   : > { %v612_v37 = vpop.eup %611  ;;  %v413_v38 = vmul.f32 %v606_v27, %v412_v32  ;;  %v396_v39 = vmul.f32 %v610_v33, %v391_v25  ;;  %vm401_vm12 = vweird.f32 %v610_v33  ;;  %vm432_vm15 = vmor %vm430_vm9, %vm431_vm11 }
  0xb7   : > { %v427_v41 = vsub.f32 1.0, %v426_v36  ;;  %v441_v43 = vmul.f32 %v612_v37, %v714_v26  ;;  %vm446_vm13 = vweird.f32 %v612_v37  ;;  %vm402_vm1 = vmor %vm400_vm14, %vm401_vm12 }
  0xb8   : > { %v414_v44 = vadd.f32 %v606_v27, %v413_v38  ;;  %v397_v45 = vsub.f32 1.0, %v396_v39  ;;  %vm447_vm4 = vmor %vm445_vm2, %vm446_vm13 }
  0xb9   : > { %v428_v48 = vmul.f32 %v608_v31, %v427_v41  ;;  %v442_v49 = vsub.f32 1.0, %v441_v43 }
  0xba   : > { %v418_v51 = vsel %vm417_vm10, %v606_v27, %v414_v44  ;;  %v398_v52 = vmul.f32 %v610_v33, %v397_v45 }
  0xbb   : > { %v423_v54 = vsel %vm717_vm7, %v422_v35, %v418_v51  ;;  %v429_v55 = vadd.f32 %v608_v31, %v428_v48  ;;  %v443_v56 = vmul.f32 %v612_v37, %v442_v49 }
  0xbc   : > { %457 = vst.msk [vmem:[%s726_s28 + $0x8] sm:$0xff] %vm455_vm5, %v423_v54  ;;  %v399_v57 = vadd.f32 %v610_v33, %v398_v52 }
  0xbd   : > { %v433_v60 = vsel %vm432_vm15, %v608_v31, %v429_v55  ;;  %v444_v61 = vadd.f32 %v612_v37, %v443_v56 }
  0xbe   : > { %v403_v62 = vsel %vm402_vm1, %v610_v33, %v399_v57  ;;  %v438_v63 = vsel %vm435_vm0, %v437_v58, %v433_v60 }
  0xbf   : > { %v408_v1 = vsel %vm405_vm3, %v407_v59, %v403_v62  ;;  %v448_v2 = vsel %vm447_vm4, %v612_v37, %v444_v61  ;;  %458 = vst.msk [vmem:[%s726_s28 + $0x10] sm:$0xff] %vm455_vm5, %v438_v63 }
  0xc0   : > { %v453_v3 = vsel %vm450_vm6, %v452_v0, %v448_v2  ;;  %456 = vst.msk [vmem:[%s726_s28] sm:$0xff] %vm455_vm5, %v408_v1 }
  0xc1   : > { %459 = vst.msk [vmem:[%s726_s28 + $0x18] sm:$0xff] %vm455_vm5, %v453_v3 }
  0xc2 PF: > { %s13_s11 = sadd.s32 1, %s654_s11   ;;  %s758_s9 = smov %s650_s10 }
  0xc3   : > { %p10_p8 = scmp.ge.s32.totalorder %s13_s11, 4   ;;  %s759_s10 = smov %s761_s13 }
  0xc5   :  { %12 = sbr.rel (!%p10_p8) target bundleno = 2 (0x2), region = 75 }
  0xca   :  { %481 = vsyncpa [#allocation4], 1 }
  0xcb   :  { %483 = vsyncpa [#allocation4 + $0x1], 1 }

</bundles_post_ra>
